<compile_context>
chip_gen: v5e
topology: v5e:2x2
jax: 0.10.0
libtpu: 0.0.40
codegen_flags: <defaults>
</compile_context>

<pallas_src>
import functools

import jax
import jax.numpy as jnp
from jax.experimental import pallas as pl
from jax.experimental.pallas import tpu as pltpu

LANE = 128


def _round_up(x, m):
    return -(-x // m) * m


# ----------------------------------------------------------------------------
# Mask construction (sequential order), matching the PyTorch create_masks().
# ----------------------------------------------------------------------------
def create_masks(input_size, hidden_size, n_hidden):
    degrees = [jnp.arange(input_size)]
    for _ in range(n_hidden):
        degrees.append(jnp.arange(hidden_size) % (input_size - 1))
    # NOTE: `% input_size - 1` parses as `(arange % input_size) - 1`, i.e.
    # arange - 1, with the same operator precedence as the PyTorch source.
    degrees.append(jnp.arange(input_size) % input_size - 1)
    masks = []
    for d0, d1 in zip(degrees[:-1], degrees[1:]):
        masks.append((d1[:, None] >= d0[None, :]).astype(jnp.float32))
    return masks, degrees[0]


# ----------------------------------------------------------------------------
# Pallas kernel: the whole masked-MLP chain (ReLU -> linear with premasked W).
# refs = (wm_0, b_0, wm_1, b_1, ..., o_ref)
#   wm_l : (in_pad_l, out_pad_l)  premasked, pre-transposed, zero-padded
#   b_l  : (1, out_pad_l) f32
# ----------------------------------------------------------------------------
def _made_net_kernel(x_ref, *refs, n_layers):
    o_ref = refs[-1]
    params = refs[:-1]
    h = x_ref[...]                               # (TB, H_pad) in dot_dtype
    for l in range(n_layers):
        wm = params[2 * l][...]                  # (in_pad, out_pad)
        b = params[2 * l + 1][...]               # (1, out_pad) f32
        h = jnp.maximum(h, 0.0).astype(wm.dtype)  # nn.ReLU()
        # F.linear(h, w*mask, b) == h @ (w*mask)^T + b ; transpose baked in.
        h = jnp.dot(h, wm, preferred_element_type=jnp.float32) + b
    o_ref[...] = h.astype(o_ref.dtype)


def made_forward(x, weights, masks, biases, *, block_b=128,
                 dot_dtype=jnp.bfloat16, return_padded=False):
    """Pallas implementation of MADE.forward (i.e. self.net(x)).

    weights[l]: (out_l, in_l) PyTorch layout; masks[l] same shape; biases[l]: (out_l,)
    dot_dtype : bf16 (default, full-rate MXU on v6e/v7x) or f32.
    block_b   : batch tile; raise to 512-1024 for big batches on v5e/v6e.
    """
    B, H = x.shape
    n_layers = len(weights)
    out_features = weights[-1].shape[0]
    out_dtype = x.dtype

    # ---- Pre-mask, transpose and zero-pad every layer to lane-dense widths.
    wms, bs = [], []
    for w, m, b in zip(weights, masks, biases):
        out_l, in_l = w.shape
        in_pad = _round_up(in_l, LANE)
        out_pad = _round_up(out_l, LANE)
        wm = (w * m).T.astype(dot_dtype)                       # (in_l, out_l)
        wm = jnp.pad(wm, ((0, in_pad - in_l), (0, out_pad - out_l)))
        b2 = jnp.pad(b.reshape(1, -1).astype(jnp.float32),
                     ((0, 0), (0, out_pad - out_l)))
        wms.append(wm)
        bs.append(b2)
    H_pad = wms[0].shape[0]
    pad_out = wms[-1].shape[1]

    # ---- Batch tiling: pad B up to a multiple of block_b (no hard assert).
    block_b = _round_up(max(8, min(block_b, _round_up(B, 8))), 8)
    B_pad = _round_up(B, block_b)

    # Cast x to the MXU dtype once (halves input DMA bytes for bf16) and pad.
    x_p = x.astype(dot_dtype)
    if (B_pad != B) or (H_pad != H):
        x_p = jnp.pad(x_p, ((0, B_pad - B), (0, H_pad - H)))

    flat_params = []
    for wm, b2 in zip(wms, bs):
        flat_params.append(wm)
        flat_params.append(b2)

    # ---- VMEM budget: 2x double-buffered I/O blocks + single-buffered params.
    dot_isz = jnp.dtype(dot_dtype).itemsize
    out_isz = jnp.dtype(out_dtype).itemsize
    param_bytes = sum(int(a.size) * a.dtype.itemsize for a in flat_params)
    io_bytes = 2 * block_b * H_pad * dot_isz + 2 * block_b * pad_out * out_isz
    vmem_limit = int(min(64 << 20, max(32 << 20, 2 * (param_bytes + io_bytes))))
    # TODO(synk): for very wide hidden layers (sum of weights > ~48 MiB) stream
    # weight tiles with pltpu.emit_pipeline instead of keeping them resident.

    flops = 2 * B_pad * sum(int(wm.shape[0]) * int(wm.shape[1]) for wm in wms)
    bytes_accessed = (int(x_p.size) * dot_isz + param_bytes
                      + B_pad * pad_out * out_isz)

    kernel = functools.partial(_made_net_kernel, n_layers=n_layers)

    def _build_call(single_buffer_params):
        in_specs = [pl.BlockSpec((block_b, H_pad), lambda i: (i, 0))]
        for wm, b2 in zip(wms, bs):
            kw = ({"pipeline_mode": pl.Buffered(1)}
                  if single_buffer_params else {})
            in_specs.append(pl.BlockSpec(wm.shape, lambda i: (0, 0), **kw))
            in_specs.append(pl.BlockSpec(b2.shape, lambda i: (0, 0), **kw))
        return pl.pallas_call(
            kernel,
            out_shape=jax.ShapeDtypeStruct((B_pad, pad_out), out_dtype),
            grid=(B_pad // block_b,),
            in_specs=in_specs,
            out_specs=pl.BlockSpec((block_b, pad_out), lambda i: (i, 0)),
            compiler_params=pltpu.CompilerParams(
                dimension_semantics=("parallel",),
                vmem_limit_bytes=vmem_limit),
            cost_estimate=pl.CostEstimate(
                flops=flops, transcendentals=0,
                bytes_accessed=bytes_accessed),
        )

    try:
        out_padded = _build_call(True)(x_p, *flat_params)
    except Exception:
        # pipeline_mode=pl.Buffered(1) not supported on this jax version.
        out_padded = _build_call(False)(x_p, *flat_params)

    if return_padded:
        return out_padded
    if (B_pad != B) or (pad_out != out_features):
        out_padded = out_padded[:B, :out_features]
    return out_padded


# ----------------------------------------------------------------------------
# Pure-JAX reference (for correctness check).
# ----------------------------------------------------------------------------
def made_forward_ref(x, weights, masks, biases):
    h = x
    for w, m, b in zip(weights, masks, biases):
        h = jnp.maximum(h, 0.0)
        h = h @ (w * m).T + b.reshape(1, -1)
    return h


# ----------------------------------------------------------------------------
# Deterministic parameter init (nn.Linear-style uniform bounds).
# ----------------------------------------------------------------------------
def init_linear(key, out_f, in_f):
    kw, kb = jax.random.split(key)
    bound = 1.0 / jnp.sqrt(in_f)
    w = jax.random.uniform(kw, (out_f, in_f), jnp.float32, -bound, bound)
    b = jax.random.uniform(kb, (out_f,), jnp.float32, -bound, bound)
    return w, b


if __name__ == "__main__":
    # Module config (out_features == in_features, as the mask shapes require).
    in_features = 16
    hidden_features = 32
    n_hidden = 2
    out_features = 16
    batch = 256        # grid of 2 x 128-row steps -> both v7x TCs get work
    block_b = 128

    all_masks, input_degrees = create_masks(in_features, hidden_features, n_hidden)
    # self.net uses masks[1:] : (n_hidden - 1) hidden layers + the output layer.
    net_masks = all_masks[1:]
    layer_dims = [(hidden_features, hidden_features)] * (n_hidden - 1) + [
        (out_features, hidden_features)
    ]

    key = jax.random.PRNGKey(0)
    keys = jax.random.split(key, len(layer_dims) + 1)
    weights, biases = [], []
    for (out_f, in_f), k in zip(layer_dims, keys[:-1]):
        w, b = init_linear(k, out_f, in_f)
        weights.append(w)
        biases.append(b)

    # forward(x) expects x of shape (batch, hidden_features).
    x = jax.random.normal(keys[-1], (batch, hidden_features), jnp.float32)

    ref = made_forward_ref(x, weights, net_masks, biases)

    # Default bf16 weight/activation path (f32 accumulation): loose tolerance.
    out_bf16 = made_forward(x, weights, net_masks, biases,
                            block_b=block_b, dot_dtype=jnp.bfloat16)
    out_bf16 = jax.block_until_ready(out_bf16)
    assert out_bf16.shape == (batch, out_features)
    assert jnp.allclose(out_bf16, ref, atol=2e-2, rtol=2e-2), "bf16 mismatch"

    # Full-f32 structural check (tighter tolerance).
    out_f32 = made_forward(x, weights, net_masks, biases,
                           block_b=block_b, dot_dtype=jnp.float32)
    out_f32 = jax.block_until_ready(out_f32)
    assert out_f32.shape == (batch, out_features)
    assert jnp.allclose(out_f32, ref, atol=5e-3, rtol=5e-3), "f32 mismatch"

    print("KERNEL_OK")
</pallas_src>

<mosaic_0001>
module attributes {stable_mosaic.version = 11 : i64} {
  func.func @_made_net_kernel(%arg0: i32, %arg1: memref<128x128xbf16, #tpu.memory_space<vmem>>, %arg2: memref<128x128xbf16, #tpu.memory_space<vmem>>, %arg3: memref<1x128xf32, #tpu.memory_space<vmem>>, %arg4: memref<128x128xbf16, #tpu.memory_space<vmem>>, %arg5: memref<1x128xf32, #tpu.memory_space<vmem>>, %arg6: memref<128x128xf32, #tpu.memory_space<vmem>>) attributes {dimension_semantics = [#tpu.dimension_semantics<parallel>], iteration_bounds = array<i64: 2>, scalar_prefetch = 0 : i64, scratch_operands = 0 : i64, tpu.core_type = #tpu.core_type<tc>, window_params = [{transform_indices = @transform_0, window_bounds = array<i64: 128, 128>}, {pipeline_mode = #tpu.pipeline_mode<synchronous>, transform_indices = @transform_1, window_bounds = array<i64: 128, 128>}, {pipeline_mode = #tpu.pipeline_mode<synchronous>, transform_indices = @transform_2, window_bounds = array<i64: 1, 128>}, {pipeline_mode = #tpu.pipeline_mode<synchronous>, transform_indices = @transform_3, window_bounds = array<i64: 128, 128>}, {pipeline_mode = #tpu.pipeline_mode<synchronous>, transform_indices = @transform_4, window_bounds = array<i64: 1, 128>}, {transform_indices = @transform_5, window_bounds = array<i64: 128, 128>}]} {
    %c0 = arith.constant 0 : index
    %c0_0 = arith.constant 0 : index
    %0 = vector.load %arg1[%c0, %c0_0] : memref<128x128xbf16, #tpu.memory_space<vmem>>, vector<128x128xbf16>
    %c0_1 = arith.constant 0 : index
    %c0_2 = arith.constant 0 : index
    %1 = vector.load %arg2[%c0_1, %c0_2] : memref<128x128xbf16, #tpu.memory_space<vmem>>, vector<128x128xbf16>
    %c0_3 = arith.constant 0 : index
    %c0_4 = arith.constant 0 : index
    %2 = vector.load %arg3[%c0_3, %c0_4] : memref<1x128xf32, #tpu.memory_space<vmem>>, vector<1x128xf32>
    %cst = arith.constant 0.000000e+00 : bf16
    %3 = vector.broadcast %cst : bf16 to vector<128x128xbf16>
    %4 = arith.maximumf %0, %3 : vector<128x128xbf16>
    %cst_5 = arith.constant dense<0.000000e+00> : vector<128x128xf32>
    %5 = tpu.matmul %4, %1, %cst_5 {dimension_numbers = #tpu.dot_dimension_numbers<[1], [0], [0], [1], [0, 0, 1, 1], [], []>} : vector<128x128xbf16>, vector<128x128xbf16>, vector<128x128xf32> -> vector<128x128xf32>
    %6 = vector.broadcast %2 : vector<1x128xf32> to vector<128x128xf32>
    %7 = arith.addf %5, %6 : vector<128x128xf32>
    %c0_6 = arith.constant 0 : index
    %c0_7 = arith.constant 0 : index
    %8 = vector.load %arg4[%c0_6, %c0_7] : memref<128x128xbf16, #tpu.memory_space<vmem>>, vector<128x128xbf16>
    %c0_8 = arith.constant 0 : index
    %c0_9 = arith.constant 0 : index
    %9 = vector.load %arg5[%c0_8, %c0_9] : memref<1x128xf32, #tpu.memory_space<vmem>>, vector<1x128xf32>
    %cst_10 = arith.constant 0.000000e+00 : f32
    %10 = vector.broadcast %cst_10 : f32 to vector<128x128xf32>
    %11 = arith.maximumf %7, %10 : vector<128x128xf32>
    %12 = arith.truncf %11 : vector<128x128xf32> to vector<128x128xbf16>
    %cst_11 = arith.constant dense<0.000000e+00> : vector<128x128xf32>
    %13 = tpu.matmul %12, %8, %cst_11 {dimension_numbers = #tpu.dot_dimension_numbers<[1], [0], [0], [1], [0, 0, 1, 1], [], []>} : vector<128x128xbf16>, vector<128x128xbf16>, vector<128x128xf32> -> vector<128x128xf32>
    %14 = vector.broadcast %9 : vector<1x128xf32> to vector<128x128xf32>
    %15 = arith.addf %13, %14 : vector<128x128xf32>
    %c0_12 = arith.constant 0 : index
    %c0_13 = arith.constant 0 : index
    %16 = vector.load %arg6[%c0_12, %c0_13] : memref<128x128xf32, #tpu.memory_space<vmem>>, vector<128x128xf32>
    tpu.vector_store %arg6[%c0_12, %c0_13], %15 {strides = array<i32>} : memref<128x128xf32, #tpu.memory_space<vmem>>, vector<128x128xf32>,
    return
  }
  func.func @transform_0(%arg0: i32) -> (i32, i32) {
    %c0_i32 = arith.constant 0 : i32
    %c0_i32_0 = arith.constant 0 : i32
    return %arg0, %c0_i32 : i32, i32
  }
  func.func @transform_1(%arg0: i32) -> (i32, i32) {
    %c0_i32 = arith.constant 0 : i32
    %c0_i32_0 = arith.constant 0 : i32
    %c0_i32_1 = arith.constant 0 : i32
    return %c0_i32, %c0_i32_0 : i32, i32
  }
  func.func @transform_2(%arg0: i32) -> (i32, i32) {
    %c0_i32 = arith.constant 0 : i32
    %c0_i32_0 = arith.constant 0 : i32
    %c0_i32_1 = arith.constant 0 : i32
    return %c0_i32, %c0_i32_0 : i32, i32
  }
  func.func @transform_3(%arg0: i32) -> (i32, i32) {
    %c0_i32 = arith.constant 0 : i32
    %c0_i32_0 = arith.constant 0 : i32
    %c0_i32_1 = arith.constant 0 : i32
    return %c0_i32, %c0_i32_0 : i32, i32
  }
  func.func @transform_4(%arg0: i32) -> (i32, i32) {
    %c0_i32 = arith.constant 0 : i32
    %c0_i32_0 = arith.constant 0 : i32
    %c0_i32_1 = arith.constant 0 : i32
    return %c0_i32, %c0_i32_0 : i32, i32
  }
  func.func @transform_5(%arg0: i32) -> (i32, i32) {
    %c0_i32 = arith.constant 0 : i32
    %c0_i32_0 = arith.constant 0 : i32
    return %arg0, %c0_i32 : i32, i32
  }
}

module attributes {stable_mosaic.version = 11 : i64} {
  func.func @_made_net_kernel(%arg0: i32, %arg1: memref<128x128xbf16, #tpu.memory_space<vmem>>, %arg2: memref<128x128xbf16, #tpu.memory_space<vmem>>, %arg3: memref<1x128xf32, #tpu.memory_space<vmem>>, %arg4: memref<128x128xbf16, #tpu.memory_space<vmem>>, %arg5: memref<1x128xf32, #tpu.memory_space<vmem>>, %arg6: memref<128x128xf32, #tpu.memory_space<vmem>>) attributes {dimension_semantics = [#tpu.dimension_semantics<parallel>], iteration_bounds = array<i64: 2>, scalar_prefetch = 0 : i64, scratch_operands = 0 : i64, tpu.core_type = #tpu.core_type<tc>, window_params = [{transform_indices = @transform_0, window_bounds = array<i64: 128, 128>}, {pipeline_mode = #tpu.pipeline_mode<synchronous>, transform_indices = @transform_1, window_bounds = array<i64: 128, 128>}, {pipeline_mode = #tpu.pipeline_mode<synchronous>, transform_indices = @transform_2, window_bounds = array<i64: 1, 128>}, {pipeline_mode = #tpu.pipeline_mode<synchronous>, transform_indices = @transform_3, window_bounds = array<i64: 128, 128>}, {pipeline_mode = #tpu.pipeline_mode<synchronous>, transform_indices = @transform_4, window_bounds = array<i64: 1, 128>}, {transform_indices = @transform_5, window_bounds = array<i64: 128, 128>}]} {
    %c0 = arith.constant 0 : index
    %c0_0 = arith.constant 0 : index
    %0 = vector.load %arg1[%c0, %c0_0] : memref<128x128xbf16, #tpu.memory_space<vmem>>, vector<128x128xbf16>
    %c0_1 = arith.constant 0 : index
    %c0_2 = arith.constant 0 : index
    %1 = vector.load %arg2[%c0_1, %c0_2] : memref<128x128xbf16, #tpu.memory_space<vmem>>, vector<128x128xbf16>
    %c0_3 = arith.constant 0 : index
    %c0_4 = arith.constant 0 : index
    %2 = vector.load %arg3[%c0_3, %c0_4] : memref<1x128xf32, #tpu.memory_space<vmem>>, vector<1x128xf32>
    %cst = arith.constant 0.000000e+00 : bf16
    %3 = vector.broadcast %cst : bf16 to vector<128x128xbf16>
    %4 = arith.maximumf %0, %3 : vector<128x128xbf16>
    %cst_5 = arith.constant dense<0.000000e+00> : vector<128x128xf32>
    %5 = tpu.matmul %4, %1, %cst_5 {dimension_numbers = #tpu.dot_dimension_numbers<[1], [0], [0], [1], [0, 0, 1, 1], [], []>} : vector<128x128xbf16>, vector<128x128xbf16>, vector<128x128xf32> -> vector<128x128xf32>
    %6 = vector.broadcast %2 : vector<1x128xf32> to vector<128x128xf32>
    %7 = arith.addf %5, %6 : vector<128x128xf32>
    %c0_6 = arith.constant 0 : index
    %c0_7 = arith.constant 0 : index
    %8 = vector.load %arg4[%c0_6, %c0_7] : memref<128x128xbf16, #tpu.memory_space<vmem>>, vector<128x128xbf16>
    %c0_8 = arith.constant 0 : index
    %c0_9 = arith.constant 0 : index
    %9 = vector.load %arg5[%c0_8, %c0_9] : memref<1x128xf32, #tpu.memory_space<vmem>>, vector<1x128xf32>
    %cst_10 = arith.constant 0.000000e+00 : f32
    %10 = vector.broadcast %cst_10 : f32 to vector<128x128xf32>
    %11 = arith.maximumf %7, %10 : vector<128x128xf32>
    %12 = arith.truncf %11 : vector<128x128xf32> to vector<128x128xbf16>
    %cst_11 = arith.constant dense<0.000000e+00> : vector<128x128xf32>
    %13 = tpu.matmul %12, %8, %cst_11 {dimension_numbers = #tpu.dot_dimension_numbers<[1], [0], [0], [1], [0, 0, 1, 1], [], []>} : vector<128x128xbf16>, vector<128x128xbf16>, vector<128x128xf32> -> vector<128x128xf32>
    %14 = vector.broadcast %9 : vector<1x128xf32> to vector<128x128xf32>
    %15 = arith.addf %13, %14 : vector<128x128xf32>
    %c0_12 = arith.constant 0 : index
    %c0_13 = arith.constant 0 : index
    %16 = vector.load %arg6[%c0_12, %c0_13] : memref<128x128xf32, #tpu.memory_space<vmem>>, vector<128x128xf32>
    tpu.vector_store %arg6[%c0_12, %c0_13], %15 {strides = array<i32>} : memref<128x128xf32, #tpu.memory_space<vmem>>, vector<128x128xf32>,
    return
  }
  func.func @transform_0(%arg0: i32) -> (i32, i32) {
    %c0_i32 = arith.constant 0 : i32
    %c0_i32_0 = arith.constant 0 : i32
    return %arg0, %c0_i32 : i32, i32
  }
  func.func @transform_1(%arg0: i32) -> (i32, i32) {
    %c0_i32 = arith.constant 0 : i32
    %c0_i32_0 = arith.constant 0 : i32
    %c0_i32_1 = arith.constant 0 : i32
    return %c0_i32, %c0_i32_0 : i32, i32
  }
  func.func @transform_2(%arg0: i32) -> (i32, i32) {
    %c0_i32 = arith.constant 0 : i32
    %c0_i32_0 = arith.constant 0 : i32
    %c0_i32_1 = arith.constant 0 : i32
    return %c0_i32, %c0_i32_0 : i32, i32
  }
  func.func @transform_3(%arg0: i32) -> (i32, i32) {
    %c0_i32 = arith.constant 0 : i32
    %c0_i32_0 = arith.constant 0 : i32
    %c0_i32_1 = arith.constant 0 : i32
    return %c0_i32, %c0_i32_0 : i32, i32
  }
  func.func @transform_4(%arg0: i32) -> (i32, i32) {
    %c0_i32 = arith.constant 0 : i32
    %c0_i32_0 = arith.constant 0 : i32
    %c0_i32_1 = arith.constant 0 : i32
    return %c0_i32, %c0_i32_0 : i32, i32
  }
  func.func @transform_5(%arg0: i32) -> (i32, i32) {
    %c0_i32 = arith.constant 0 : i32
    %c0_i32_0 = arith.constant 0 : i32
    return %arg0, %c0_i32 : i32, i32
  }
}

</mosaic_0001>

<bundles_post_ra>
// kernel: tpu_custom_call.1
= control target key start
LH: loop header
LB: loop body
LE: loop exit
PB: predicated region body
PF: predicated region fallthrough
CT: control target
= control target key end

     0   :  { %10 = vsyncpa [#allocation3], 0  ;;  %s1330_s0 = inlined_call_operand.hbm [shape: bf16[256,128], index: 0, kind: input, shape index: {}]   ;;  %s1331_s1 = inlined_call_operand.hbm [shape: bf16[128,128], index: 1, kind: input, shape index: {}]   ;;  %s1332_s2 = inlined_call_operand.vmem [shape: f32[1,128], index: 2, kind: input, shape index: {}]   ;;  %s1333_s3 = inlined_call_operand.hbm [shape: bf16[128,128], index: 3, kind: input, shape index: {}]   ;;  %s1334_s4 = inlined_call_operand.vmem [shape: f32[1,128], index: 4, kind: input, shape index: {}]   ;;  %s1335_s5 = inlined_call_operand.hbm [shape: f32[256,128], index: 5, kind: output, shape index: {}]  }
   0x1   :  { %12 = vsyncpa [#allocation3 + $0x1], 0 }
   0x2   :  { %13 = vsyncpa [#allocation6], 0 }
   0x3   :  { %14 = vsyncpa [#allocation4], 0 }
   0x4   :  { %16 = vsyncpa [#allocation4 + $0x1], 0  ;;  %s1144_s18 = smov 0   ;;  %s1146_s19 = smov 0  }
   0x5   :  { %s1148_s20 = smov 0   ;;  %s1150_s21 = smov 0  }
   0x6 LB: > { %s1165_s22 = sadd.s32 4294967295, %s1106_s21   ;;  %s718_s23 = sadd.s32 4294967294, %s1106_s21   ;;  %s1106_s21 = sphi %s1150_s21, %s1347_s21   ;;  %s1102_s20 = sphi %s1148_s20, %s1346_s20   ;;  %s1098_s19 = sphi %s1146_s19, %s1345_s19   ;;  %s1094_s18 = sphi %s1144_s18, %s1344_s18  }
   0x7   : > { %p42_p0 = scmp.ne.s32.totalorder %s1098_s19, %s1094_s18  ;;  %p43_p1 = scmp.eq.s32.totalorder %s1165_s22, 0 }
   0x8   : > { %p150_p2 = scmp.eq.s32.totalorder %s1165_s22, 1  ;;  %p156_p3 = scmp.eq.s32.totalorder %s718_s23, 1 }
   0x9   : > { %p1174_p4 = por %p43_p1, %p42_p0  ;;  %p719_p5 = scmp.ge.s32.totalorder %s1106_s21, 1 }
   0xa   : > { %p1179_p6 = por %p156_p3, %p42_p0  ;;  %p163_p7 = scmp.lt.s32.totalorder %s1106_s21, 3 }
   0xb   : > { %s174_s28 = sshll.u32 %s1331_s1, 4  ;;  %s1108_s30 = smov [#allocation5]   ;;  %s175_s28 = int_to_ptr.hbm [resolvable:$true] %s174_s28 }
   0xc   : > { %p1187_p8 = pnand %p719_p5, %p163_p7  ;;  %s176_s6 = sshll.u32 %s1108_s30, 4  ;;  %s177_s6 = int_to_ptr.vmem [resolvable:$true] %s176_s6 }
   0xd   : > { %s191_s9 = sshll.u32 %s1333_s3, 4  ;;  %s1336_s10 = smov 64   ;;  %s192_s9 = int_to_ptr.hbm [resolvable:$true] %s191_s9 }
   0xe   : > { %p885_p9 = pneg %p1187_p8  ;;  %s1110_s11 = smov 4  }
   0xf   : > { %s1111_s12 = smov [#allocation7]   ;;  %s1206_s14 = sadd.s32 1, %s1106_s21  }
  0x10   : > { %p886_p10 = pnand %p885_p9, %p43_p1  ;;  %s193_s13 = sshll.u32 %s1111_s12, 4  ;;  %s194_s13 = int_to_ptr.vmem [resolvable:$true] %s193_s13 }
  0x11   : > { %s29_s15 = sadd.s32 1, %s1102_s20  ;;  %s26_s16 = ssub.s32 %s1106_s21, %s1206_s14 }
  0x12   : > { %888 = dma.hbm_to_vmem [thread:$0]  (!%p886_p10), %s175_s28, 1024, %s177_s6, [#allocation6], %s1336_s10, %s1336_s10, %s1110_s11  }
  0x13   : > { %891 = dma.hbm_to_vmem [thread:$0]  (!%p886_p10), %s192_s9, 1024, %s194_s13, [#allocation6], %s1336_s10, %s1336_s10, %s1110_s11  }
  0x14   : > { %p36_p12 = scmp.ne.s32.totalorder %s1102_s20, %s1098_s19  ;;  %p27_p13 = scmp.eq.s32.totalorder %s26_s16, 0 }
  0x15   : > { %p37_p0 = scmp.eq.s32.totalorder %s1106_s21, 0  ;;  %p902_p5 = scmp.lt.s32.totalorder %s1106_s21, 2 }
  0x16   : > { %p1216_p3 = por %p150_p2, %p36_p12  ;;  %s210_s26 = sand.u32 1, %s1102_s20  }
  0x17   : > { %s1222_s23 = scalar_select %p27_p13, %s1102_s20, %s29_s15  }
  0x18   : > { %p38_p7 = por %p37_p0, %p36_p12  ;;  %s723_s27 = sshll.u32 %s210_s26, 6 }
  0x19   : > { %s800_s28 = sshll.u32 %s1106_s21, 6  ;;  %s214_s8 = scalar_lea.vmem [#allocation2], %s723_s27 }
  0x1a   : > { %s219_s7 = scalar_lea.hbm %s1330_s0, %s800_s28  ;;  %s222_s9 = sshll.u32 %s214_s8, 4  ;;  %s223_s9 = int_to_ptr.vmem [resolvable:$true] %s222_s9 }
  0x1b   : > { %s220_s12 = sshll.u32 %s219_s7, 4  ;;  %p1229_p2 = pnand %p902_p5, %p38_p7  ;;  %s221_s12 = int_to_ptr.hbm [resolvable:$true] %s220_s12 }
  0x1c   : > { %s211_s15 = scalar_lea.sflag [#allocation3], %s210_s26  ;;  %s1006_s16 = sshra.s32 %s221_s12, 4  ;;  %s1007_s16 = int_to_ptr.hbm [resolvable:$true] %s1006_s16 }
  0x1d   : > { %s1008_s10 = scalar_lea.hbm %s1007_s16, 64  ;;  %p1010_p10 = pneg %p1229_p2 }
  0x1e   : > { %p1009_p9 = scmp.ne.s32.totalorder %s1007_s16, %s1008_s10  ;;  %s1013_s30 = scalar_lea.hbm %s1330_s0, 128 }
  0x1f   : > { %p1014_p0 = scmp.lt.s32.totalorder %s1007_s16, %s1330_s0  ;;  %p1015_p5 = scmp.lt.s32.totalorder %s1013_s30, %s1008_s10 }
  0x20   : > { %p1011_p12 = pnand %p1010_p10, %p1009_p9 }
  0x21   : > { %p1016_p7 = por %p1015_p5, %p1014_p0 }
  0x22   : > { %p1012_p13 = pneg %p1011_p12 }
  0x24   : > { %p1017_p11 = pnand %p1016_p7, %p1012_p13 }
  0x26   : > { %1020 = shalt.err (!%p1017_p11)
}
  0x27   : > { %s1342_s26 = smov 64   ;;  %234 = sbr.rel (%p1187_p8) target bundleno = 419 (0x1a3), region = 40 }
  0x28   : > { %895 = dma.hbm_to_vmem [thread:$0]  (!%p1229_p2), %s221_s12, 1024, %s223_s9, %s211_s15, %s1342_s26, %s1342_s26, %s1110_s11  }
  0x29   : > { %s1249_s8 = sand.u32 (!%p1187_p8), 1, %s1098_s19  }
  0x2a   : > { %s727_s16 = sshll.u32 (!%p1187_p8), %s1249_s8, 6  ;;  %s237_s10 = scalar_lea.sflag (!%p1187_p8), [#allocation3], %s1249_s8 }
  0x2b   : > { %s1253_s28 = scalar_lea.vmem (!%p1187_p8), [#allocation2], %s727_s16 }
  0x2c   : > { %1081 = dma.done.wait (%p1174_p4), %s237_s10, 1024  }
  0x2d   : > { %1083 = vsyncadd (%p1174_p4), %s237_s10, 4294966272 }
  0x2e   : > { %1085 = dma.done.wait (%p43_p1), [#allocation6], 2048  }
  0x2f   : > { %1087 = vsyncadd (%p43_p1), [#allocation6], 4294965248  ;;  %v808_v0 = vld [vmem:[#allocation5 + $0x38] sm:$0xff]  ;;  %v807_v1 = vld [vmem:[#allocation5 + $0x30] sm:$0xff]  ;;  %s730_s11 = sshll.u32 %s1249_s8, 7  ;;  %s817_s15 = sshll.u32 %s1165_s22, 7 }
  0x30   : > { %404 = vmatpush.bf16.msra.mxu0 %v808_v0  ;;  %857 = vmatpush.bf16.msra.mxu2 %v808_v0  ;;  %v806_v2 = vld [vmem:[#allocation5 + $0x28] sm:$0xff]  ;;  %v805_v3 = vld [vmem:[#allocation5 + $0x20] sm:$0xff]  ;;  %v804_v4 = vld [vmem:[#allocation5 + $0x18] sm:$0xff]  ;;  %s1278_s13 = scalar_lea.vmem [#allocation8], %s730_s11  ;;  %s622_s6 = scalar_lea.hbm %s1335_s5, %s817_s15 }
  0x31   : > { %v803_v5 = vld [vmem:[#allocation5 + $0x10] sm:$0xff]  ;;  %v819_v6 = vld [vmem:[%s1253_s28] sm:$0xff]   ;;  %v802_v12 = vld [vmem:[#allocation5 + $0x8] sm:$0xff]  ;;  %s623_s7 = sshll.u32 %s1278_s13, 4  ;;  %s625_s26 = sshll.u32 %s622_s6, 4  ;;  %s624_s7 = int_to_ptr.vmem [resolvable:$true] %s623_s7  ;;  %s626_s26 = int_to_ptr.hbm [resolvable:$true] %s625_s26 }
  0x32   : > { %v853_v7 = vld [vmem:[%s1253_s28 + $0x20] sm:$0xff]   ;;  %v820_v8 = vunpack.c.l.bf16 %v819_v6  ;;  %v821_v9 = vunpack.c.h.bf16 %v819_v6  ;;  %v850_v20 = vld [vmem:[%s1253_s28 + $0x8] sm:$0xff]   ;;  %v816_v32 = vld [vmem:[#allocation7 + $0x38] sm:$0xff]  ;;  %s611_s16 = scalar_lea.sflag [#allocation4], %s1249_s8  ;;  %s1050_s10 = sshra.s32 %s626_s26, 4  ;;  %s1051_s10 = int_to_ptr.hbm [resolvable:$true] %s1050_s10 }
  0x33   : > { %v836_v10 = vunpack.c.l.bf16 %v853_v7  ;;  %v837_v11 = vunpack.c.h.bf16 %v853_v7  ;;  %v801_v17 = vld [vmem:[#allocation5] sm:$0xff]  ;;  %v854_v21 = vld [vmem:[%s1253_s28 + $0x28] sm:$0xff]   ;;  %v824_v22 = vunpack.c.l.bf16 %v850_v20  ;;  %v825_v23 = vunpack.c.h.bf16 %v850_v20  ;;  %v851_v33 = vld [vmem:[%s1253_s28 + $0x10] sm:$0xff]   ;;  %545 = vmatpush.bf16.msra.mxu1 %v816_v32  ;;  %865 = vmatpush.bf16.msra.mxu3 %v816_v32  ;;  %s1056_s29 = scalar_lea.hbm %s1335_s5, 256  ;;  %p1057_p11 = scmp.lt.s32.totalorder %s1051_s10, %s1335_s5 }
  0x34   : > { %405 = vmatpush.bf16.msra.mxu0 %v807_v1  ;;  %858 = vmatpush.bf16.msra.mxu2 %v807_v1  ;;  %v329_v13 = vmax.f32 %v820_v8, 0.0  ;;  %v330_v14 = vmax.f32 %v821_v9, 0.0  ;;  %v840_v24 = vunpack.c.l.bf16 %v854_v21  ;;  %v841_v25 = vunpack.c.h.bf16 %v854_v21  ;;  %v855_v34 = vld [vmem:[%s1253_s28 + $0x30] sm:$0xff]   ;;  %v814_v40 = vld [vmem:[#allocation7 + $0x28] sm:$0xff]  ;;  %v813_v45 = vld [vmem:[#allocation7 + $0x20] sm:$0xff] }
  0x35   : > { %v337_v15 = vmax.f32 %v836_v10, 0.0  ;;  %v338_v16 = vmax.f32 %v837_v11, 0.0  ;;  %v331_v26 = vmax.f32 %v824_v22, 0.0  ;;  %v332_v27 = vmax.f32 %v825_v23, 0.0  ;;  %v815_v35 = vld [vmem:[#allocation7 + $0x30] sm:$0xff]  ;;  %v852_v48 = vld [vmem:[%s1253_s28 + $0x18] sm:$0xff]  }
  0x36   : > { %v345_v18 = vpack.c.bf16 %v330_v14, %v329_v13  ;;  %v339_v28 = vmax.f32 %v840_v24, 0.0  ;;  %v340_v29 = vmax.f32 %v841_v25, 0.0  ;;  %v828_v36 = vunpack.c.l.bf16 %v851_v33  ;;  %v856_v49 = vld [vmem:[%s1253_s28 + $0x38] sm:$0xff]   ;;  %v811_v61 = vld [vmem:[#allocation7 + $0x10] sm:$0xff]  ;;  %v810_v62 = vld [vmem:[#allocation7 + $0x8] sm:$0xff]  ;;  %s1052_s28 = scalar_lea.hbm %s1051_s10, 128 }
  0x37   : > { %v349_v19 = vpack.c.bf16 %v338_v16, %v337_v15  ;;  %v346_v30 = vpack.c.bf16 %v332_v27, %v331_v26  ;;  %v829_v37 = vunpack.c.h.bf16 %v851_v33  ;;  %v844_v38 = vunpack.c.l.bf16 %v855_v34  ;;  %546 = vmatpush.bf16.msra.mxu1 %v815_v35  ;;  %866 = vmatpush.bf16.msra.mxu3 %v815_v35  ;;  %v812_v60 = vld [vmem:[#allocation7 + $0x18] sm:$0xff]  ;;  %v809_v63 = vld [vmem:[#allocation7] sm:$0xff]  ;;  %p1053_p1 = scmp.ne.s32.totalorder %s1051_s10, %s1052_s28  ;;  %p1058_p2 = scmp.lt.s32.totalorder %s1056_s29, %s1052_s28 }
  0x38   : > { %406 = vmatpush.bf16.msra.mxu0 %v806_v2  ;;  %859 = vmatpush.bf16.msra.mxu2 %v806_v2  ;;  %v350_v31 = vpack.c.bf16 %v340_v29, %v339_v28  ;;  %v845_v39 = vunpack.c.h.bf16 %v855_v34  ;;  %v333_v41 = vmax.f32 %v828_v36, 0.0  ;;  %v832_v50 = vunpack.c.l.bf16 %v852_v48  ;;  %v944_v1 = vld [vmem:[%s1332_s2] ss:$0 sm:$0xff] }
  0x39   : > { %v334_v42 = vmax.f32 %v829_v37, 0.0  ;;  %v341_v43 = vmax.f32 %v844_v38, 0.0  ;;  %v833_v51 = vunpack.c.h.bf16 %v852_v48  ;;  %v848_v52 = vunpack.c.l.bf16 %v856_v49  ;;  %p1054_p4 = pnand %p1053_p1, %p1216_p3  ;;  %p1059_p9 = por %p1058_p2, %p1057_p11 }
  0x3a   : > { %v342_v44 = vmax.f32 %v845_v39, 0.0  ;;  %v849_v53 = vunpack.c.h.bf16 %v856_v49  ;;  %v335_v54 = vmax.f32 %v832_v50, 0.0 }
  0x3b   : > { %547 = vmatpush.bf16.msra.mxu1 %v814_v40  ;;  %867 = vmatpush.bf16.msra.mxu3 %v814_v40  ;;  %v347_v46 = vpack.c.bf16 %v334_v42, %v333_v41  ;;  %v336_v55 = vmax.f32 %v833_v51, 0.0  ;;  %v343_v56 = vmax.f32 %v848_v52, 0.0  ;;  %p1055_p8 = pneg %p1054_p4 }
  0x3c   : > { %407 = vmatpush.bf16.msra.mxu0 %v805_v3  ;;  %860 = vmatpush.bf16.msra.mxu2 %v805_v3  ;;  %v351_v47 = vpack.c.bf16 %v342_v44, %v341_v43  ;;  %v344_v57 = vmax.f32 %v849_v53, 0.0 }
  0x3d   : > { %v348_v58 = vpack.c.bf16 %v336_v55, %v335_v54  ;;  %p1060_p10 = pnand %p1059_p9, %p1055_p8 }
  0x3e   : > { %v352_v59 = vpack.c.bf16 %v344_v57, %v343_v56  ;;  %v945_v57 = vld [vmem:[%s1334_s4] ss:$0 sm:$0xff] }
  0x3f   : > { %548 = vmatpush.bf16.msra.mxu1 %v813_v45  ;;  %868 = vmatpush.bf16.msra.mxu3 %v813_v45 }
  0x40   : > { %408 = vmatpush.bf16.msra.mxu0 %v804_v4  ;;  %861 = vmatpush.bf16.msra.mxu2 %v804_v4 }
  0x43   : > { %549 = vmatpush.bf16.msra.mxu1 %v812_v60  ;;  %869 = vmatpush.bf16.msra.mxu3 %v812_v60 }
  0x44   : > { %409 = vmatpush.bf16.msra.mxu0 %v803_v5  ;;  %862 = vmatpush.bf16.msra.mxu2 %v803_v5 }
  0x47   : > { %550 = vmatpush.bf16.msra.mxu1 %v811_v61  ;;  %870 = vmatpush.bf16.msra.mxu3 %v811_v61 }
  0x48   : > { %410 = vmatpush.bf16.msra.mxu0 %v802_v12  ;;  %863 = vmatpush.bf16.msra.mxu2 %v802_v12 }
  0x4b   : > { %551 = vmatpush.bf16.msra.mxu1 %v810_v62  ;;  %871 = vmatpush.bf16.msra.mxu3 %v810_v62 }
  0x4c   : > { %411 = vmatpush.bf16.msra.mxu0 %v801_v17  ;;  %864 = vmatpush.bf16.msra.mxu2 %v801_v17 }
  0x4f   : > { %412 = vmatmul.bf16.vlgmr.msra.gmra.mxu0 %v345_v18  ;;  %432 = vmatmul.bf16.vlgmr.msra.gmra.mxu2 %v349_v19 }
  0x50   : > { %552 = vmatpush.bf16.msra.mxu1 %v809_v63  ;;  %872 = vmatpush.bf16.msra.mxu3 %v809_v63 }
  0x5f   : > { %417 = vmatmul.bf16.gmra.mxu0 %v346_v30  ;;  %437 = vmatmul.bf16.gmra.mxu2 %v350_v31 }
  0x6f   : > { %422 = vmatmul.bf16.gmra.mxu0 %v347_v46  ;;  %442 = vmatmul.bf16.gmra.mxu2 %v351_v47 }
  0x7f   : > { %427 = vmatmul.bf16.gmra.mxu0 %v348_v58  ;;  %447 = vmatmul.bf16.gmra.mxu2 %v352_v59 }
  0xcc   : > { %v413_v0 = vpop.f32.mrf.mxu0 }
  0xcd   : > { %v414_v2 = vadd.f32 %v944_v1, %v413_v0 }
  0xcf   : > { %v470_v5 = vmax.f32 %v414_v2, 0.0 }
  0xd2   : > { %v433_v3 = vpop.f32.mrf.mxu2 }
  0xd3   : > { %v434_v8 = vadd.f32 %v944_v1, %v433_v3 }
  0xd4   : > { %v415_v4 = vpop.f32.mrf.mxu0 }
  0xd5   : > { %v416_v6 = vadd.f32 %v944_v1, %v415_v4  ;;  %v478_v13 = vmax.f32 %v434_v8, 0.0 }
  0xd7   : > { %v471_v7 = vmax.f32 %v416_v6, 0.0 }
  0xd9   : > { %v486_v9 = vpack.c.bf16 %v471_v7, %v470_v5 }
  0xda   : > { %v435_v10 = vpop.f32.mrf.mxu2 }
  0xdb   : > { %v436_v11 = vadd.f32 %v944_v1, %v435_v10  ;;  %553 = vmatmul.bf16.vlgmr.msra.gmra.mxu1 %v486_v9 }
  0xdc   : > { %v418_v12 = vpop.f32.mrf.mxu0 }
  0xdd   : > { %v479_v14 = vmax.f32 %v436_v11, 0.0  ;;  %v419_v16 = vadd.f32 %v944_v1, %v418_v12 }
  0xdf   : > { %v490_v15 = vpack.c.bf16 %v479_v14, %v478_v13  ;;  %v472_v19 = vmax.f32 %v419_v16, 0.0 }
  0xe1   : > { %573 = vmatmul.bf16.vlgmr.msra.gmra.mxu3 %v490_v15 }
  0xe2   : > { %v438_v17 = vpop.f32.mrf.mxu2 }
  0xe3   : > { %v439_v22 = vadd.f32 %v944_v1, %v438_v17 }
  0xe4   : > { %v420_v18 = vpop.f32.mrf.mxu0 }
  0xe5   : > { %v421_v20 = vadd.f32 %v944_v1, %v420_v18  ;;  %v480_v27 = vmax.f32 %v439_v22, 0.0 }
  0xe7   : > { %v473_v21 = vmax.f32 %v421_v20, 0.0 }
  0xe9   : > { %v487_v23 = vpack.c.bf16 %v473_v21, %v472_v19 }
  0xea   : > { %v440_v24 = vpop.f32.mrf.mxu2 }
  0xeb   : > { %v441_v25 = vadd.f32 %v944_v1, %v440_v24  ;;  %558 = vmatmul.bf16.gmra.mxu1 %v487_v23 }
  0xec   : > { %v423_v26 = vpop.f32.mrf.mxu0 }
  0xed   : > { %v481_v28 = vmax.f32 %v441_v25, 0.0  ;;  %v424_v30 = vadd.f32 %v944_v1, %v423_v26 }
  0xef   : > { %v491_v29 = vpack.c.bf16 %v481_v28, %v480_v27  ;;  %v474_v33 = vmax.f32 %v424_v30, 0.0 }
  0xf1   : > { %578 = vmatmul.bf16.gmra.mxu3 %v491_v29 }
  0xf2   : > { %v443_v31 = vpop.f32.mrf.mxu2 }
  0xf3   : > { %v444_v36 = vadd.f32 %v944_v1, %v443_v31 }
  0xf4   : > { %v425_v32 = vpop.f32.mrf.mxu0 }
  0xf5   : > { %v426_v34 = vadd.f32 %v944_v1, %v425_v32  ;;  %v482_v41 = vmax.f32 %v444_v36, 0.0 }
  0xf7   : > { %v475_v35 = vmax.f32 %v426_v34, 0.0 }
  0xf9   : > { %v488_v37 = vpack.c.bf16 %v475_v35, %v474_v33 }
  0xfa   : > { %v445_v38 = vpop.f32.mrf.mxu2 }
  0xfb   : > { %v446_v39 = vadd.f32 %v944_v1, %v445_v38  ;;  %563 = vmatmul.bf16.gmra.mxu1 %v488_v37 }
  0xfc   : > { %v428_v40 = vpop.f32.mrf.mxu0 }
  0xfd   : > { %v483_v42 = vmax.f32 %v446_v39, 0.0  ;;  %v429_v44 = vadd.f32 %v944_v1, %v428_v40 }
  0xff   : > { %v492_v43 = vpack.c.bf16 %v483_v42, %v482_v41  ;;  %v476_v47 = vmax.f32 %v429_v44, 0.0 }
 0x101   : > { %583 = vmatmul.bf16.gmra.mxu3 %v492_v43 }
 0x102   : > { %v448_v45 = vpop.f32.mrf.mxu2 }
 0x103   : > { %v449_v50 = vadd.f32 %v944_v1, %v448_v45 }
 0x104   : > { %v430_v46 = vpop.f32.mrf.mxu0 }
 0x105   : > { %v431_v48 = vadd.f32 %v944_v1, %v430_v46  ;;  %v484_v54 = vmax.f32 %v449_v50, 0.0 }
 0x107   : > { %v477_v49 = vmax.f32 %v431_v48, 0.0 }
 0x109   : > { %v489_v51 = vpack.c.bf16 %v477_v49, %v476_v47 }
 0x10a   : > { %v450_v52 = vpop.f32.mrf.mxu2 }
 0x10b   : > { %v451_v53 = vadd.f32 %v944_v1, %v450_v52  ;;  %568 = vmatmul.bf16.gmra.mxu1 %v489_v51 }
 0x10d   : > { %v485_v55 = vmax.f32 %v451_v53, 0.0 }
 0x10f   : > { %v493_v56 = vpack.c.bf16 %v485_v55, %v484_v54 }
 0x111   : > { %588 = vmatmul.bf16.gmra.mxu3 %v493_v56 }
 0x158   : > { %v554_v58 = vpop.f32.mrf.mxu1 }
 0x159   : > { %v555_v59 = vadd.f32 %v945_v57, %v554_v58 }
 0x15b   : > { %594 = vst [vmem:[%s1278_s13] sm:$0xff] %v555_v59 }
 0x160   : > { %v556_v60 = vpop.f32.mrf.mxu1 }
 0x161   : > { %v557_v61 = vadd.f32 %v945_v57, %v556_v60 }
 0x163   : > { %595 = vst [vmem:[%s1278_s13 + $0x8] sm:$0xff] %v557_v61 }
 0x164   : > { %v574_v62 = vpop.f32.mrf.mxu3 }
 0x165   : > { %v575_v63 = vadd.f32 %v945_v57, %v574_v62 }
 0x167   : > { %602 = vst [vmem:[%s1278_s13 + $0x40] sm:$0xff] %v575_v63 }
 0x168   : > { %v559_v0 = vpop.f32.mrf.mxu1 }
 0x169   : > { %v560_v1 = vadd.f32 %v945_v57, %v559_v0 }
 0x16b   : > { %596 = vst [vmem:[%s1278_s13 + $0x10] sm:$0xff] %v560_v1 }
 0x16c   : > { %v576_v2 = vpop.f32.mrf.mxu3 }
 0x16d   : > { %v577_v3 = vadd.f32 %v945_v57, %v576_v2 }
 0x16f   : > { %603 = vst [vmem:[%s1278_s13 + $0x48] sm:$0xff] %v577_v3 }
 0x170   : > { %v561_v4 = vpop.f32.mrf.mxu1 }
 0x171   : > { %v562_v5 = vadd.f32 %v945_v57, %v561_v4 }
 0x173   : > { %597 = vst [vmem:[%s1278_s13 + $0x18] sm:$0xff] %v562_v5 }
 0x174   : > { %v579_v6 = vpop.f32.mrf.mxu3 }
 0x175   : > { %v580_v7 = vadd.f32 %v945_v57, %v579_v6 }
 0x177   : > { %604 = vst [vmem:[%s1278_s13 + $0x50] sm:$0xff] %v580_v7 }
 0x178   : > { %v564_v8 = vpop.f32.mrf.mxu1 }
 0x179   : > { %v565_v9 = vadd.f32 %v945_v57, %v564_v8 }
 0x17b   : > { %598 = vst [vmem:[%s1278_s13 + $0x20] sm:$0xff] %v565_v9 }
 0x17c   : > { %v581_v10 = vpop.f32.mrf.mxu3 }
 0x17d   : > { %v582_v11 = vadd.f32 %v945_v57, %v581_v10 }
 0x17f   : > { %605 = vst [vmem:[%s1278_s13 + $0x58] sm:$0xff] %v582_v11 }
 0x180   : > { %v566_v12 = vpop.f32.mrf.mxu1 }
 0x181   : > { %v567_v13 = vadd.f32 %v945_v57, %v566_v12 }
 0x183   : > { %599 = vst [vmem:[%s1278_s13 + $0x28] sm:$0xff] %v567_v13 }
 0x184   : > { %v584_v14 = vpop.f32.mrf.mxu3 }
 0x185   : > { %v585_v15 = vadd.f32 %v945_v57, %v584_v14 }
 0x187   : > { %606 = vst [vmem:[%s1278_s13 + $0x60] sm:$0xff] %v585_v15 }
 0x188   : > { %v569_v16 = vpop.f32.mrf.mxu1 }
 0x189   : > { %v570_v17 = vadd.f32 %v945_v57, %v569_v16 }
 0x18b   : > { %600 = vst [vmem:[%s1278_s13 + $0x30] sm:$0xff] %v570_v17 }
 0x18c   : > { %v586_v18 = vpop.f32.mrf.mxu3 }
 0x18d   : > { %v587_v19 = vadd.f32 %v945_v57, %v586_v18 }
 0x18f   : > { %607 = vst [vmem:[%s1278_s13 + $0x68] sm:$0xff] %v587_v19 }
 0x190   : > { %v571_v20 = vpop.f32.mrf.mxu1 }
 0x191   : > { %v572_v21 = vadd.f32 %v945_v57, %v571_v20 }
 0x193   : > { %601 = vst [vmem:[%s1278_s13 + $0x38] sm:$0xff] %v572_v21 }
 0x194   : > { %v589_v22 = vpop.f32.mrf.mxu3 }
 0x195   : > { %v590_v23 = vadd.f32 %v945_v57, %v589_v22 }
 0x197   : > { %608 = vst [vmem:[%s1278_s13 + $0x70] sm:$0xff] %v590_v23 }
 0x19c   : > { %v591_v24 = vpop.f32.mrf.mxu3 }
 0x19d   : > { %v592_v25 = vadd.f32 %v945_v57, %v591_v24 }
 0x19f   : > { %609 = vst [vmem:[%s1278_s13 + $0x78] sm:$0xff] %v592_v25 }
 0x1a0   : > { %1063 = shalt.err (!%p1060_p10)
}
 0x1a1   : > { %s1112_s8 = smov 128   ;;  %s1113_s12 = smov 8  }
 0x1a2   : > { %883 = dma.vmem_to_hbm [thread:$0]  (%p1216_p3), %s624_s7, 2048, %s626_s26, %s611_s16, %s1112_s8, %s1112_s8, %s1113_s12  }
 0x1a3 PF: > { %s640_s13 = sand.u32 1, %s1094_s18   ;;  %p1343_p12 = scmp.ge.s32.totalorder %s1106_s21, 2 }
 0x1a4   : > { %s641_s15 = scalar_lea.sflag [#allocation4], %s640_s13 }
 0x1a5   : > { %p897_p13 = pnand %p1343_p12, %p1179_p6 }
 0x1a7   : > { %p898_p0 = pneg %p897_p13 }
 0x1a9   : > { %1089 = dma.done.wait (%p898_p0), %s641_s15, 2048  }
 0x1aa   : > { %1091 = vsyncadd (%p898_p0), %s641_s15, 4294965248  ;;  %p19_p5 = scmp.ge.s32.totalorder %s1206_s14, 4   ;;  %s1344_s18 = smov %s1098_s19 }
 0x1ab   : > { %s1345_s19 = smov %s1102_s20  ;;  %s1346_s20 = smov %s1222_s23 }
 0x1ac   : > { %s1347_s21 = smov %s1206_s14  ;;  %21 = sbr.rel (!%p19_p5) target bundleno = 6 (0x6), region = 93 }
 0x1b1   :  { %647 = vsyncpa [#allocation3], 1 }
 0x1b2   :  { %649 = vsyncpa [#allocation3 + $0x1], 1 }
 0x1b3   :  { %650 = vsyncpa [#allocation6], 1 }
 0x1b4   :  { %651 = vsyncpa [#allocation4], 1 }
 0x1b5   :  { %653 = vsyncpa [#allocation4 + $0x1], 1 }

// kernel: tpu_custom_call.1
= control target key start
LH: loop header
LB: loop body
LE: loop exit
PB: predicated region body
PF: predicated region fallthrough
CT: control target
= control target key end

     0   :  { %10 = vsyncpa [#allocation3], 0  ;;  %s1330_s0 = inlined_call_operand.hbm [shape: bf16[256,128], index: 0, kind: input, shape index: {}]   ;;  %s1331_s1 = inlined_call_operand.hbm [shape: bf16[128,128], index: 1, kind: input, shape index: {}]   ;;  %s1332_s2 = inlined_call_operand.vmem [shape: f32[1,128], index: 2, kind: input, shape index: {}]   ;;  %s1333_s3 = inlined_call_operand.hbm [shape: bf16[128,128], index: 3, kind: input, shape index: {}]   ;;  %s1334_s4 = inlined_call_operand.vmem [shape: f32[1,128], index: 4, kind: input, shape index: {}]   ;;  %s1335_s5 = inlined_call_operand.hbm [shape: f32[256,128], index: 5, kind: output, shape index: {}]  }
   0x1   :  { %12 = vsyncpa [#allocation3 + $0x1], 0 }
   0x2   :  { %13 = vsyncpa [#allocation6], 0 }
   0x3   :  { %14 = vsyncpa [#allocation4], 0 }
   0x4   :  { %16 = vsyncpa [#allocation4 + $0x1], 0  ;;  %s1144_s18 = smov 0   ;;  %s1146_s19 = smov 0  }
   0x5   :  { %s1148_s20 = smov 0   ;;  %s1150_s21 = smov 0  }
   0x6 LB: > { %s1165_s22 = sadd.s32 4294967295, %s1106_s21   ;;  %s718_s23 = sadd.s32 4294967294, %s1106_s21   ;;  %s1106_s21 = sphi %s1150_s21, %s1347_s21   ;;  %s1102_s20 = sphi %s1148_s20, %s1346_s20   ;;  %s1098_s19 = sphi %s1146_s19, %s1345_s19   ;;  %s1094_s18 = sphi %s1144_s18, %s1344_s18  }
   0x7   : > { %p42_p0 = scmp.ne.s32.totalorder %s1098_s19, %s1094_s18  ;;  %p43_p1 = scmp.eq.s32.totalorder %s1165_s22, 0 }
   0x8   : > { %p150_p2 = scmp.eq.s32.totalorder %s1165_s22, 1  ;;  %p156_p3 = scmp.eq.s32.totalorder %s718_s23, 1 }
   0x9   : > { %p1174_p4 = por %p43_p1, %p42_p0  ;;  %p719_p5 = scmp.ge.s32.totalorder %s1106_s21, 1 }
   0xa   : > { %p1179_p6 = por %p156_p3, %p42_p0  ;;  %p163_p7 = scmp.lt.s32.totalorder %s1106_s21, 3 }
   0xb   : > { %s174_s28 = sshll.u32 %s1331_s1, 4  ;;  %s1108_s30 = smov [#allocation5]   ;;  %s175_s28 = int_to_ptr.hbm [resolvable:$true] %s174_s28 }
   0xc   : > { %p1187_p8 = pnand %p719_p5, %p163_p7  ;;  %s176_s6 = sshll.u32 %s1108_s30, 4  ;;  %s177_s6 = int_to_ptr.vmem [resolvable:$true] %s176_s6 }
   0xd   : > { %s191_s9 = sshll.u32 %s1333_s3, 4  ;;  %s1336_s10 = smov 64   ;;  %s192_s9 = int_to_ptr.hbm [resolvable:$true] %s191_s9 }
   0xe   : > { %p885_p9 = pneg %p1187_p8  ;;  %s1110_s11 = smov 4  }
   0xf   : > { %s1111_s12 = smov [#allocation7]   ;;  %s1206_s14 = sadd.s32 1, %s1106_s21  }
  0x10   : > { %p886_p10 = pnand %p885_p9, %p43_p1  ;;  %s193_s13 = sshll.u32 %s1111_s12, 4  ;;  %s194_s13 = int_to_ptr.vmem [resolvable:$true] %s193_s13 }
  0x11   : > { %s29_s15 = sadd.s32 1, %s1102_s20  ;;  %s26_s16 = ssub.s32 %s1106_s21, %s1206_s14 }
  0x12   : > { %888 = dma.hbm_to_vmem [thread:$0]  (!%p886_p10), %s175_s28, 1024, %s177_s6, [#allocation6], %s1336_s10, %s1336_s10, %s1110_s11  }
  0x13   : > { %891 = dma.hbm_to_vmem [thread:$0]  (!%p886_p10), %s192_s9, 1024, %s194_s13, [#allocation6], %s1336_s10, %s1336_s10, %s1110_s11  }
  0x14   : > { %p36_p12 = scmp.ne.s32.totalorder %s1102_s20, %s1098_s19  ;;  %p27_p13 = scmp.eq.s32.totalorder %s26_s16, 0 }
  0x15   : > { %p37_p0 = scmp.eq.s32.totalorder %s1106_s21, 0  ;;  %p902_p5 = scmp.lt.s32.totalorder %s1106_s21, 2 }
  0x16   : > { %p1216_p3 = por %p150_p2, %p36_p12  ;;  %s210_s26 = sand.u32 1, %s1102_s20  }
  0x17   : > { %s1222_s23 = scalar_select %p27_p13, %s1102_s20, %s29_s15  }
  0x18   : > { %p38_p7 = por %p37_p0, %p36_p12  ;;  %s723_s27 = sshll.u32 %s210_s26, 6 }
  0x19   : > { %s800_s28 = sshll.u32 %s1106_s21, 6  ;;  %s214_s8 = scalar_lea.vmem [#allocation2], %s723_s27 }
  0x1a   : > { %s219_s7 = scalar_lea.hbm %s1330_s0, %s800_s28  ;;  %s222_s9 = sshll.u32 %s214_s8, 4  ;;  %s223_s9 = int_to_ptr.vmem [resolvable:$true] %s222_s9 }
  0x1b   : > { %s220_s12 = sshll.u32 %s219_s7, 4  ;;  %p1229_p2 = pnand %p902_p5, %p38_p7  ;;  %s221_s12 = int_to_ptr.hbm [resolvable:$true] %s220_s12 }
  0x1c   : > { %s211_s15 = scalar_lea.sflag [#allocation3], %s210_s26  ;;  %s1006_s16 = sshra.s32 %s221_s12, 4  ;;  %s1007_s16 = int_to_ptr.hbm [resolvable:$true] %s1006_s16 }
  0x1d   : > { %s1008_s10 = scalar_lea.hbm %s1007_s16, 64  ;;  %p1010_p10 = pneg %p1229_p2 }
  0x1e   : > { %p1009_p9 = scmp.ne.s32.totalorder %s1007_s16, %s1008_s10  ;;  %s1013_s30 = scalar_lea.hbm %s1330_s0, 128 }
  0x1f   : > { %p1014_p0 = scmp.lt.s32.totalorder %s1007_s16, %s1330_s0  ;;  %p1015_p5 = scmp.lt.s32.totalorder %s1013_s30, %s1008_s10 }
  0x20   : > { %p1011_p12 = pnand %p1010_p10, %p1009_p9 }
  0x21   : > { %p1016_p7 = por %p1015_p5, %p1014_p0 }
  0x22   : > { %p1012_p13 = pneg %p1011_p12 }
  0x24   : > { %p1017_p11 = pnand %p1016_p7, %p1012_p13 }
  0x26   : > { %1020 = shalt.err (!%p1017_p11)
}
  0x27   : > { %s1342_s26 = smov 64   ;;  %234 = sbr.rel (%p1187_p8) target bundleno = 419 (0x1a3), region = 40 }
  0x28   : > { %895 = dma.hbm_to_vmem [thread:$0]  (!%p1229_p2), %s221_s12, 1024, %s223_s9, %s211_s15, %s1342_s26, %s1342_s26, %s1110_s11  }
  0x29   : > { %s1249_s8 = sand.u32 (!%p1187_p8), 1, %s1098_s19  }
  0x2a   : > { %s727_s16 = sshll.u32 (!%p1187_p8), %s1249_s8, 6  ;;  %s237_s10 = scalar_lea.sflag (!%p1187_p8), [#allocation3], %s1249_s8 }
  0x2b   : > { %s1253_s28 = scalar_lea.vmem (!%p1187_p8), [#allocation2], %s727_s16 }
  0x2c   : > { %1081 = dma.done.wait (%p1174_p4), %s237_s10, 1024  }
  0x2d   : > { %1083 = vsyncadd (%p1174_p4), %s237_s10, 4294966272 }
  0x2e   : > { %1085 = dma.done.wait (%p43_p1), [#allocation6], 2048  }
  0x2f   : > { %1087 = vsyncadd (%p43_p1), [#allocation6], 4294965248  ;;  %v808_v0 = vld [vmem:[#allocation5 + $0x38] sm:$0xff]  ;;  %v807_v1 = vld [vmem:[#allocation5 + $0x30] sm:$0xff]  ;;  %s730_s11 = sshll.u32 %s1249_s8, 7  ;;  %s817_s15 = sshll.u32 %s1165_s22, 7 }
  0x30   : > { %404 = vmatpush.bf16.msra.mxu0 %v808_v0  ;;  %857 = vmatpush.bf16.msra.mxu2 %v808_v0  ;;  %v806_v2 = vld [vmem:[#allocation5 + $0x28] sm:$0xff]  ;;  %v805_v3 = vld [vmem:[#allocation5 + $0x20] sm:$0xff]  ;;  %v804_v4 = vld [vmem:[#allocation5 + $0x18] sm:$0xff]  ;;  %s1278_s13 = scalar_lea.vmem [#allocation8], %s730_s11  ;;  %s622_s6 = scalar_lea.hbm %s1335_s5, %s817_s15 }
  0x31   : > { %v803_v5 = vld [vmem:[#allocation5 + $0x10] sm:$0xff]  ;;  %v819_v6 = vld [vmem:[%s1253_s28] sm:$0xff]   ;;  %v802_v12 = vld [vmem:[#allocation5 + $0x8] sm:$0xff]  ;;  %s623_s7 = sshll.u32 %s1278_s13, 4  ;;  %s625_s26 = sshll.u32 %s622_s6, 4  ;;  %s624_s7 = int_to_ptr.vmem [resolvable:$true] %s623_s7  ;;  %s626_s26 = int_to_ptr.hbm [resolvable:$true] %s625_s26 }
  0x32   : > { %v853_v7 = vld [vmem:[%s1253_s28 + $0x20] sm:$0xff]   ;;  %v820_v8 = vunpack.c.l.bf16 %v819_v6  ;;  %v821_v9 = vunpack.c.h.bf16 %v819_v6  ;;  %v850_v20 = vld [vmem:[%s1253_s28 + $0x8] sm:$0xff]   ;;  %v816_v32 = vld [vmem:[#allocation7 + $0x38] sm:$0xff]  ;;  %s611_s16 = scalar_lea.sflag [#allocation4], %s1249_s8  ;;  %s1050_s10 = sshra.s32 %s626_s26, 4  ;;  %s1051_s10 = int_to_ptr.hbm [resolvable:$true] %s1050_s10 }
  0x33   : > { %v836_v10 = vunpack.c.l.bf16 %v853_v7  ;;  %v837_v11 = vunpack.c.h.bf16 %v853_v7  ;;  %v801_v17 = vld [vmem:[#allocation5] sm:$0xff]  ;;  %v854_v21 = vld [vmem:[%s1253_s28 + $0x28] sm:$0xff]   ;;  %v824_v22 = vunpack.c.l.bf16 %v850_v20  ;;  %v825_v23 = vunpack.c.h.bf16 %v850_v20  ;;  %v851_v33 = vld [vmem:[%s1253_s28 + $0x10] sm:$0xff]   ;;  %545 = vmatpush.bf16.msra.mxu1 %v816_v32  ;;  %865 = vmatpush.bf16.msra.mxu3 %v816_v32  ;;  %s1056_s29 = scalar_lea.hbm %s1335_s5, 256  ;;  %p1057_p11 = scmp.lt.s32.totalorder %s1051_s10, %s1335_s5 }
  0x34   : > { %405 = vmatpush.bf16.msra.mxu0 %v807_v1  ;;  %858 = vmatpush.bf16.msra.mxu2 %v807_v1  ;;  %v329_v13 = vmax.f32 %v820_v8, 0.0  ;;  %v330_v14 = vmax.f32 %v821_v9, 0.0  ;;  %v840_v24 = vunpack.c.l.bf16 %v854_v21  ;;  %v841_v25 = vunpack.c.h.bf16 %v854_v21  ;;  %v855_v34 = vld [vmem:[%s1253_s28 + $0x30] sm:$0xff]   ;;  %v814_v40 = vld [vmem:[#allocation7 + $0x28] sm:$0xff]  ;;  %v813_v45 = vld [vmem:[#allocation7 + $0x20] sm:$0xff] }
  0x35   : > { %v337_v15 = vmax.f32 %v836_v10, 0.0  ;;  %v338_v16 = vmax.f32 %v837_v11, 0.0  ;;  %v331_v26 = vmax.f32 %v824_v22, 0.0  ;;  %v332_v27 = vmax.f32 %v825_v23, 0.0  ;;  %v815_v35 = vld [vmem:[#allocation7 + $0x30] sm:$0xff]  ;;  %v852_v48 = vld [vmem:[%s1253_s28 + $0x18] sm:$0xff]  }
  0x36   : > { %v345_v18 = vpack.c.bf16 %v330_v14, %v329_v13  ;;  %v339_v28 = vmax.f32 %v840_v24, 0.0  ;;  %v340_v29 = vmax.f32 %v841_v25, 0.0  ;;  %v828_v36 = vunpack.c.l.bf16 %v851_v33  ;;  %v856_v49 = vld [vmem:[%s1253_s28 + $0x38] sm:$0xff]   ;;  %v811_v61 = vld [vmem:[#allocation7 + $0x10] sm:$0xff]  ;;  %v810_v62 = vld [vmem:[#allocation7 + $0x8] sm:$0xff]  ;;  %s1052_s28 = scalar_lea.hbm %s1051_s10, 128 }
  0x37   : > { %v349_v19 = vpack.c.bf16 %v338_v16, %v337_v15  ;;  %v346_v30 = vpack.c.bf16 %v332_v27, %v331_v26  ;;  %v829_v37 = vunpack.c.h.bf16 %v851_v33  ;;  %v844_v38 = vunpack.c.l.bf16 %v855_v34  ;;  %546 = vmatpush.bf16.msra.mxu1 %v815_v35  ;;  %866 = vmatpush.bf16.msra.mxu3 %v815_v35  ;;  %v812_v60 = vld [vmem:[#allocation7 + $0x18] sm:$0xff]  ;;  %v809_v63 = vld [vmem:[#allocation7] sm:$0xff]  ;;  %p1053_p1 = scmp.ne.s32.totalorder %s1051_s10, %s1052_s28  ;;  %p1058_p2 = scmp.lt.s32.totalorder %s1056_s29, %s1052_s28 }
  0x38   : > { %406 = vmatpush.bf16.msra.mxu0 %v806_v2  ;;  %859 = vmatpush.bf16.msra.mxu2 %v806_v2  ;;  %v350_v31 = vpack.c.bf16 %v340_v29, %v339_v28  ;;  %v845_v39 = vunpack.c.h.bf16 %v855_v34  ;;  %v333_v41 = vmax.f32 %v828_v36, 0.0  ;;  %v832_v50 = vunpack.c.l.bf16 %v852_v48  ;;  %v944_v1 = vld [vmem:[%s1332_s2] ss:$0 sm:$0xff] }
  0x39   : > { %v334_v42 = vmax.f32 %v829_v37, 0.0  ;;  %v341_v43 = vmax.f32 %v844_v38, 0.0  ;;  %v833_v51 = vunpack.c.h.bf16 %v852_v48  ;;  %v848_v52 = vunpack.c.l.bf16 %v856_v49  ;;  %p1054_p4 = pnand %p1053_p1, %p1216_p3  ;;  %p1059_p9 = por %p1058_p2, %p1057_p11 }
  0x3a   : > { %v342_v44 = vmax.f32 %v845_v39, 0.0  ;;  %v849_v53 = vunpack.c.h.bf16 %v856_v49  ;;  %v335_v54 = vmax.f32 %v832_v50, 0.0 }
  0x3b   : > { %547 = vmatpush.bf16.msra.mxu1 %v814_v40  ;;  %867 = vmatpush.bf16.msra.mxu3 %v814_v40  ;;  %v347_v46 = vpack.c.bf16 %v334_v42, %v333_v41  ;;  %v336_v55 = vmax.f32 %v833_v51, 0.0  ;;  %v343_v56 = vmax.f32 %v848_v52, 0.0  ;;  %p1055_p8 = pneg %p1054_p4 }
  0x3c   : > { %407 = vmatpush.bf16.msra.mxu0 %v805_v3  ;;  %860 = vmatpush.bf16.msra.mxu2 %v805_v3  ;;  %v351_v47 = vpack.c.bf16 %v342_v44, %v341_v43  ;;  %v344_v57 = vmax.f32 %v849_v53, 0.0 }
  0x3d   : > { %v348_v58 = vpack.c.bf16 %v336_v55, %v335_v54  ;;  %p1060_p10 = pnand %p1059_p9, %p1055_p8 }
  0x3e   : > { %v352_v59 = vpack.c.bf16 %v344_v57, %v343_v56  ;;  %v945_v57 = vld [vmem:[%s1334_s4] ss:$0 sm:$0xff] }
  0x3f   : > { %548 = vmatpush.bf16.msra.mxu1 %v813_v45  ;;  %868 = vmatpush.bf16.msra.mxu3 %v813_v45 }
  0x40   : > { %408 = vmatpush.bf16.msra.mxu0 %v804_v4  ;;  %861 = vmatpush.bf16.msra.mxu2 %v804_v4 }
  0x43   : > { %549 = vmatpush.bf16.msra.mxu1 %v812_v60  ;;  %869 = vmatpush.bf16.msra.mxu3 %v812_v60 }
  0x44   : > { %409 = vmatpush.bf16.msra.mxu0 %v803_v5  ;;  %862 = vmatpush.bf16.msra.mxu2 %v803_v5 }
  0x47   : > { %550 = vmatpush.bf16.msra.mxu1 %v811_v61  ;;  %870 = vmatpush.bf16.msra.mxu3 %v811_v61 }
  0x48   : > { %410 = vmatpush.bf16.msra.mxu0 %v802_v12  ;;  %863 = vmatpush.bf16.msra.mxu2 %v802_v12 }
  0x4b   : > { %551 = vmatpush.bf16.msra.mxu1 %v810_v62  ;;  %871 = vmatpush.bf16.msra.mxu3 %v810_v62 }
  0x4c   : > { %411 = vmatpush.bf16.msra.mxu0 %v801_v17  ;;  %864 = vmatpush.bf16.msra.mxu2 %v801_v17 }
  0x4f   : > { %412 = vmatmul.bf16.vlgmr.msra.gmra.mxu0 %v345_v18  ;;  %432 = vmatmul.bf16.vlgmr.msra.gmra.mxu2 %v349_v19 }
  0x50   : > { %552 = vmatpush.bf16.msra.mxu1 %v809_v63  ;;  %872 = vmatpush.bf16.msra.mxu3 %v809_v63 }
  0x5f   : > { %417 = vmatmul.bf16.gmra.mxu0 %v346_v30  ;;  %437 = vmatmul.bf16.gmra.mxu2 %v350_v31 }
  0x6f   : > { %422 = vmatmul.bf16.gmra.mxu0 %v347_v46  ;;  %442 = vmatmul.bf16.gmra.mxu2 %v351_v47 }
  0x7f   : > { %427 = vmatmul.bf16.gmra.mxu0 %v348_v58  ;;  %447 = vmatmul.bf16.gmra.mxu2 %v352_v59 }
  0xcc   : > { %v413_v0 = vpop.f32.mrf.mxu0 }
  0xcd   : > { %v414_v2 = vadd.f32 %v944_v1, %v413_v0 }
  0xcf   : > { %v470_v5 = vmax.f32 %v414_v2, 0.0 }
  0xd2   : > { %v433_v3 = vpop.f32.mrf.mxu2 }
  0xd3   : > { %v434_v8 = vadd.f32 %v944_v1, %v433_v3 }
  0xd4   : > { %v415_v4 = vpop.f32.mrf.mxu0 }
  0xd5   : > { %v416_v6 = vadd.f32 %v944_v1, %v415_v4  ;;  %v478_v13 = vmax.f32 %v434_v8, 0.0 }
  0xd7   : > { %v471_v7 = vmax.f32 %v416_v6, 0.0 }
  0xd9   : > { %v486_v9 = vpack.c.bf16 %v471_v7, %v470_v5 }
  0xda   : > { %v435_v10 = vpop.f32.mrf.mxu2 }
  0xdb   : > { %v436_v11 = vadd.f32 %v944_v1, %v435_v10  ;;  %553 = vmatmul.bf16.vlgmr.msra.gmra.mxu1 %v486_v9 }
  0xdc   : > { %v418_v12 = vpop.f32.mrf.mxu0 }
  0xdd   : > { %v479_v14 = vmax.f32 %v436_v11, 0.0  ;;  %v419_v16 = vadd.f32 %v944_v1, %v418_v12 }
  0xdf   : > { %v490_v15 = vpack.c.bf16 %v479_v14, %v478_v13  ;;  %v472_v19 = vmax.f32 %v419_v16, 0.0 }
  0xe1   : > { %573 = vmatmul.bf16.vlgmr.msra.gmra.mxu3 %v490_v15 }
  0xe2   : > { %v438_v17 = vpop.f32.mrf.mxu2 }
  0xe3   : > { %v439_v22 = vadd.f32 %v944_v1, %v438_v17 }
  0xe4   : > { %v420_v18 = vpop.f32.mrf.mxu0 }
  0xe5   : > { %v421_v20 = vadd.f32 %v944_v1, %v420_v18  ;;  %v480_v27 = vmax.f32 %v439_v22, 0.0 }
  0xe7   : > { %v473_v21 = vmax.f32 %v421_v20, 0.0 }
  0xe9   : > { %v487_v23 = vpack.c.bf16 %v473_v21, %v472_v19 }
  0xea   : > { %v440_v24 = vpop.f32.mrf.mxu2 }
  0xeb   : > { %v441_v25 = vadd.f32 %v944_v1, %v440_v24  ;;  %558 = vmatmul.bf16.gmra.mxu1 %v487_v23 }
  0xec   : > { %v423_v26 = vpop.f32.mrf.mxu0 }
  0xed   : > { %v481_v28 = vmax.f32 %v441_v25, 0.0  ;;  %v424_v30 = vadd.f32 %v944_v1, %v423_v26 }
  0xef   : > { %v491_v29 = vpack.c.bf16 %v481_v28, %v480_v27  ;;  %v474_v33 = vmax.f32 %v424_v30, 0.0 }
  0xf1   : > { %578 = vmatmul.bf16.gmra.mxu3 %v491_v29 }
  0xf2   : > { %v443_v31 = vpop.f32.mrf.mxu2 }
  0xf3   : > { %v444_v36 = vadd.f32 %v944_v1, %v443_v31 }
  0xf4   : > { %v425_v32 = vpop.f32.mrf.mxu0 }
  0xf5   : > { %v426_v34 = vadd.f32 %v944_v1, %v425_v32  ;;  %v482_v41 = vmax.f32 %v444_v36, 0.0 }
  0xf7   : > { %v475_v35 = vmax.f32 %v426_v34, 0.0 }
  0xf9   : > { %v488_v37 = vpack.c.bf16 %v475_v35, %v474_v33 }
  0xfa   : > { %v445_v38 = vpop.f32.mrf.mxu2 }
  0xfb   : > { %v446_v39 = vadd.f32 %v944_v1, %v445_v38  ;;  %563 = vmatmul.bf16.gmra.mxu1 %v488_v37 }
  0xfc   : > { %v428_v40 = vpop.f32.mrf.mxu0 }
  0xfd   : > { %v483_v42 = vmax.f32 %v446_v39, 0.0  ;;  %v429_v44 = vadd.f32 %v944_v1, %v428_v40 }
  0xff   : > { %v492_v43 = vpack.c.bf16 %v483_v42, %v482_v41  ;;  %v476_v47 = vmax.f32 %v429_v44, 0.0 }
 0x101   : > { %583 = vmatmul.bf16.gmra.mxu3 %v492_v43 }
 0x102   : > { %v448_v45 = vpop.f32.mrf.mxu2 }
 0x103   : > { %v449_v50 = vadd.f32 %v944_v1, %v448_v45 }
 0x104   : > { %v430_v46 = vpop.f32.mrf.mxu0 }
 0x105   : > { %v431_v48 = vadd.f32 %v944_v1, %v430_v46  ;;  %v484_v54 = vmax.f32 %v449_v50, 0.0 }
 0x107   : > { %v477_v49 = vmax.f32 %v431_v48, 0.0 }
 0x109   : > { %v489_v51 = vpack.c.bf16 %v477_v49, %v476_v47 }
 0x10a   : > { %v450_v52 = vpop.f32.mrf.mxu2 }
 0x10b   : > { %v451_v53 = vadd.f32 %v944_v1, %v450_v52  ;;  %568 = vmatmul.bf16.gmra.mxu1 %v489_v51 }
 0x10d   : > { %v485_v55 = vmax.f32 %v451_v53, 0.0 }
 0x10f   : > { %v493_v56 = vpack.c.bf16 %v485_v55, %v484_v54 }
 0x111   : > { %588 = vmatmul.bf16.gmra.mxu3 %v493_v56 }
 0x158   : > { %v554_v58 = vpop.f32.mrf.mxu1 }
 0x159   : > { %v555_v59 = vadd.f32 %v945_v57, %v554_v58 }
 0x15b   : > { %594 = vst [vmem:[%s1278_s13] sm:$0xff] %v555_v59 }
 0x160   : > { %v556_v60 = vpop.f32.mrf.mxu1 }
 0x161   : > { %v557_v61 = vadd.f32 %v945_v57, %v556_v60 }
 0x163   : > { %595 = vst [vmem:[%s1278_s13 + $0x8] sm:$0xff] %v557_v61 }
 0x164   : > { %v574_v62 = vpop.f32.mrf.mxu3 }
 0x165   : > { %v575_v63 = vadd.f32 %v945_v57, %v574_v62 }
 0x167   : > { %602 = vst [vmem:[%s1278_s13 + $0x40] sm:$0xff] %v575_v63 }
 0x168   : > { %v559_v0 = vpop.f32.mrf.mxu1 }
 0x169   : > { %v560_v1 = vadd.f32 %v945_v57, %v559_v0 }
 0x16b   : > { %596 = vst [vmem:[%s1278_s13 + $0x10] sm:$0xff] %v560_v1 }
 0x16c   : > { %v576_v2 = vpop.f32.mrf.mxu3 }
 0x16d   : > { %v577_v3 = vadd.f32 %v945_v57, %v576_v2 }
 0x16f   : > { %603 = vst [vmem:[%s1278_s13 + $0x48] sm:$0xff] %v577_v3 }
 0x170   : > { %v561_v4 = vpop.f32.mrf.mxu1 }
 0x171   : > { %v562_v5 = vadd.f32 %v945_v57, %v561_v4 }
 0x173   : > { %597 = vst [vmem:[%s1278_s13 + $0x18] sm:$0xff] %v562_v5 }
 0x174   : > { %v579_v6 = vpop.f32.mrf.mxu3 }
 0x175   : > { %v580_v7 = vadd.f32 %v945_v57, %v579_v6 }
 0x177   : > { %604 = vst [vmem:[%s1278_s13 + $0x50] sm:$0xff] %v580_v7 }
 0x178   : > { %v564_v8 = vpop.f32.mrf.mxu1 }
 0x179   : > { %v565_v9 = vadd.f32 %v945_v57, %v564_v8 }
 0x17b   : > { %598 = vst [vmem:[%s1278_s13 + $0x20] sm:$0xff] %v565_v9 }
 0x17c   : > { %v581_v10 = vpop.f32.mrf.mxu3 }
 0x17d   : > { %v582_v11 = vadd.f32 %v945_v57, %v581_v10 }
 0x17f   : > { %605 = vst [vmem:[%s1278_s13 + $0x58] sm:$0xff] %v582_v11 }
 0x180   : > { %v566_v12 = vpop.f32.mrf.mxu1 }
 0x181   : > { %v567_v13 = vadd.f32 %v945_v57, %v566_v12 }
 0x183   : > { %599 = vst [vmem:[%s1278_s13 + $0x28] sm:$0xff] %v567_v13 }
 0x184   : > { %v584_v14 = vpop.f32.mrf.mxu3 }
 0x185   : > { %v585_v15 = vadd.f32 %v945_v57, %v584_v14 }
 0x187   : > { %606 = vst [vmem:[%s1278_s13 + $0x60] sm:$0xff] %v585_v15 }
 0x188   : > { %v569_v16 = vpop.f32.mrf.mxu1 }
 0x189   : > { %v570_v17 = vadd.f32 %v945_v57, %v569_v16 }
 0x18b   : > { %600 = vst [vmem:[%s1278_s13 + $0x30] sm:$0xff] %v570_v17 }
 0x18c   : > { %v586_v18 = vpop.f32.mrf.mxu3 }
 0x18d   : > { %v587_v19 = vadd.f32 %v945_v57, %v586_v18 }
 0x18f   : > { %607 = vst [vmem:[%s1278_s13 + $0x68] sm:$0xff] %v587_v19 }
 0x190   : > { %v571_v20 = vpop.f32.mrf.mxu1 }
 0x191   : > { %v572_v21 = vadd.f32 %v945_v57, %v571_v20 }
 0x193   : > { %601 = vst [vmem:[%s1278_s13 + $0x38] sm:$0xff] %v572_v21 }
 0x194   : > { %v589_v22 = vpop.f32.mrf.mxu3 }
 0x195   : > { %v590_v23 = vadd.f32 %v945_v57, %v589_v22 }
 0x197   : > { %608 = vst [vmem:[%s1278_s13 + $0x70] sm:$0xff] %v590_v23 }
 0x19c   : > { %v591_v24 = vpop.f32.mrf.mxu3 }
 0x19d   : > { %v592_v25 = vadd.f32 %v945_v57, %v591_v24 }
 0x19f   : > { %609 = vst [vmem:[%s1278_s13 + $0x78] sm:$0xff] %v592_v25 }
 0x1a0   : > { %1063 = shalt.err (!%p1060_p10)
}
 0x1a1   : > { %s1112_s8 = smov 128   ;;  %s1113_s12 = smov 8  }
 0x1a2   : > { %883 = dma.vmem_to_hbm [thread:$0]  (%p1216_p3), %s624_s7, 2048, %s626_s26, %s611_s16, %s1112_s8, %s1112_s8, %s1113_s12  }
 0x1a3 PF: > { %s640_s13 = sand.u32 1, %s1094_s18   ;;  %p1343_p12 = scmp.ge.s32.totalorder %s1106_s21, 2 }
 0x1a4   : > { %s641_s15 = scalar_lea.sflag [#allocation4], %s640_s13 }
 0x1a5   : > { %p897_p13 = pnand %p1343_p12, %p1179_p6 }
 0x1a7   : > { %p898_p0 = pneg %p897_p13 }
 0x1a9   : > { %1089 = dma.done.wait (%p898_p0), %s641_s15, 2048  }
 0x1aa   : > { %1091 = vsyncadd (%p898_p0), %s641_s15, 4294965248  ;;  %p19_p5 = scmp.ge.s32.totalorder %s1206_s14, 4   ;;  %s1344_s18 = smov %s1098_s19 }
 0x1ab   : > { %s1345_s19 = smov %s1102_s20  ;;  %s1346_s20 = smov %s1222_s23 }
 0x1ac   : > { %s1347_s21 = smov %s1206_s14  ;;  %21 = sbr.rel (!%p19_p5) target bundleno = 6 (0x6), region = 93 }
 0x1b1   :  { %647 = vsyncpa [#allocation3], 1 }
 0x1b2   :  { %649 = vsyncpa [#allocation3 + $0x1], 1 }
 0x1b3   :  { %650 = vsyncpa [#allocation6], 1 }
 0x1b4   :  { %651 = vsyncpa [#allocation4], 1 }
 0x1b5   :  { %653 = vsyncpa [#allocation4 + $0x1], 1 }

</bundles_post_ra>
